<compile_context>
chip_gen: v7x
topology: tpu7x:2x2x1
jax: 0.10.0
libtpu: 0.0.40
codegen_flags: <defaults>
</compile_context>

<pallas_src>
import functools

import jax
import jax.numpy as jnp
from jax.experimental import pallas as pl
from jax.experimental.pallas import tpu as pltpu


def _vq_kernel(z_ref, e_ref, esq_ref, zq_ref, idx_ref, sse_ref):
    """Quantize one (e_dim, tile_hw) column-block of z against the full codebook.

    Refs (block shapes):
      z_ref   : (1, e_dim, tile_hw)   encoder output columns (one vector per lane)
      e_ref   : (n_e, e_dim)          codebook (single resident copy)
      esq_ref : (n_e, 1)  f32         precomputed 0.5 * ||e_j||^2
      zq_ref  : (1, e_dim, tile_hw)   quantized columns (lane-dense)
      idx_ref : (1, 1, 1, tile_hw)    argmin indices, int32 (lane-dense)
      sse_ref : (1, 1, 1, 1)    f32   per-tile sum((z_q - z)^2)
    """
    zc = z_ref[0]                                   # (e_dim, tn), native dtype
    e = e_ref[...]                                  # (n_e, e_dim)
    esq_half = esq_ref[...]                         # (n_e, 1) f32, = 0.5*||e_j||^2
    n_e = e.shape[0]

    # Reduced distances: d[j, p] = 0.5*||e_j||^2 - e_j . z_p     -> (n_e, tn)
    # (argmin-equivalent to ||z_p||^2 + ||e_j||^2 - 2 e_j . z_p; the dropped
    #  ||z||^2 term and the /2 scale are per-column / positive constants.)
    cross = jnp.dot(e, zc, preferred_element_type=jnp.float32)       # (n_e, tn) MXU
    d = esq_half - cross                                             # 1 VPU pass

    # Integer argmin over the codebook axis (sublanes); first-min tie break
    # like torch.argmin.  All in int32 — no float iota / sentinel / final cast.
    d_min = jnp.min(d, axis=0, keepdims=True)                        # (1, tn)
    row_iota = jax.lax.broadcasted_iota(jnp.int32, d.shape, 0)       # (n_e, tn) int32
    idx = jnp.min(jnp.where(d == d_min, row_iota, n_e),
                  axis=0, keepdims=True)                             # (1, tn) int32

    onehot = row_iota == idx                                         # (n_e, tn) bool
    # z_q columns: contract the codebook's n_e axis against the one-hot's n_e axis
    # -> (e_dim, tn).  Uses the single resident codebook copy (no e^T input).
    zq = jax.lax.dot_general(
        e, onehot.astype(e.dtype),
        dimension_numbers=(((0,), (0,)), ((), ())),
        preferred_element_type=jnp.float32)                          # (e_dim, tn) f32

    zq_ref[0] = zq.astype(zq_ref.dtype)
    idx_ref[0, 0] = idx

    # Per-tile SSE partial (summed in the wrapper -> loss); no cross-step
    # accumulator, so the grid stays fully parallel.
    # TODO(synk): could move this scalar to an SMEM output once vreg->sreg scalar
    # extraction is robust; kept as a tiny VMEM block for guaranteed lowering.
    diff = zq - zc.astype(jnp.float32)
    sse = jnp.sum(diff * diff, axis=1, keepdims=True)                # (e_dim, 1)
    sse_ref[0, 0] = jnp.sum(sse, axis=0, keepdims=True)              # (1, 1)


def _vmem_budget_bytes():
    """Per-generation VMEM budget (~3/4 of physical per-TC VMEM).

    v5e/v6e: 128 MiB -> ~96 MiB; v7x: 64 MiB -> ~48 MiB.  Falls back to 48 MiB
    if the hardware query is unavailable.
    """
    try:
        cap = int(pltpu.get_tpu_info().vmem_capacity_bytes)
        if cap > 0:
            return cap * 3 // 4
    except Exception:
        pass
    return 48 * 1024 * 1024


def _pick_tile_hw(hw, n_e, e_dim, itemsize, vmem_budget):
    """Largest multiple of 128 dividing hw that fits the VMEM live-set model."""
    # Per spatial column (tile_hw = t):
    #   ~6 live f32 (n_e, t) intermediates (cross/d, compare, iota, where, onehot,
    #   matmul staging) + double-buffered z-in / zq-out blocks + int32 idx block.
    per_col = 6 * n_e * 4 + 4 * e_dim * itemsize + 2 * 4
    # Resident (double-buffered) codebook + 0.5*||e||^2.
    fixed = 2 * n_e * e_dim * itemsize + 2 * n_e * 4
    avail = max(vmem_budget - fixed, 2 * 1024 * 1024)
    cap = max(128, (avail // per_col) // 128 * 128)

    best = None
    t = 128
    while t <= min(hw, cap):
        if hw % t == 0:
            best = t
        t += 128
    # TODO(synk): pad + mask the spatial tail when H*W has no multiple-of-128 divisor.
    return best if best is not None else hw


def _vq_pallas(z3, embedding, *, tile_hw=None):
    """z3: (B, e_dim, H*W) channel-major view of NCHW input; embedding: (n_e, e_dim)."""
    b, e_dim, hw = z3.shape
    n_e = embedding.shape[0]

    vmem_budget = _vmem_budget_bytes()
    itemsize = jnp.dtype(z3.dtype).itemsize
    if tile_hw is None:
        tile_hw = _pick_tile_hw(hw, n_e, e_dim, itemsize, vmem_budget)
    assert hw % tile_hw == 0
    n_t = hw // tile_hw

    # Single codebook copy in the activation dtype (f32 inputs stay f32 — no bf16
    # convert passes on v5e); codebook half-norms precomputed once in f32.
    e = embedding.astype(z3.dtype)                                            # (n_e, e_dim)
    esq_half = 0.5 * jnp.sum(embedding.astype(jnp.float32) ** 2,
                             axis=1, keepdims=True)                           # (n_e, 1)

    out_shapes = (
        jax.ShapeDtypeStruct((b, e_dim, hw), z3.dtype),              # z_q (channel-major)
        jax.ShapeDtypeStruct((b, n_t, 1, tile_hw), jnp.int32),       # argmin indices
        jax.ShapeDtypeStruct((b, n_t, 1, 1), jnp.float32),           # per-tile SSE partials
    )

    grid_spec = pltpu.PrefetchScalarGridSpec(
        num_scalar_prefetch=0,
        grid=(b, n_t),
        in_specs=[
            pl.BlockSpec((1, e_dim, tile_hw), lambda i, j: (i, 0, j)),   # z columns
            pl.BlockSpec((n_e, e_dim), lambda i, j: (0, 0)),             # codebook
            pl.BlockSpec((n_e, 1), lambda i, j: (0, 0)),                 # 0.5*||e||^2
        ],
        out_specs=[
            pl.BlockSpec((1, e_dim, tile_hw), lambda i, j: (i, 0, j)),
            pl.BlockSpec((1, 1, 1, tile_hw), lambda i, j: (i, j, 0, 0)),
            pl.BlockSpec((1, 1, 1, 1), lambda i, j: (i, j, 0, 0)),
        ],
    )

    return pl.pallas_call(
        _vq_kernel,
        out_shape=out_shapes,
        grid_spec=grid_spec,
        compiler_params=pltpu.CompilerParams(
            # No cross-step accumulators -> both axes can shard across TCs (v7x megacore).
            dimension_semantics=("parallel", "parallel"),
            # Per-generation budget (~96 MiB v5e/v6e, ~48 MiB v7x); the tile
            # heuristic above is solved against the same number.
            vmem_limit_bytes=vmem_budget,
        ),
    )(z3, e, esq_half)


@functools.partial(jax.jit, static_argnames=("beta",))
def vector_quantizer_forward(z, embedding, beta):
    """Forward pass of VectorQuantizer.

    z: (B, C, H, W) with C == e_dim (NCHW, like the PyTorch module).
    embedding: (n_e, e_dim) codebook.
    Returns (loss, z_q [NCHW], perplexity, min_encodings, min_encoding_indices).
    """
    b, c, h, w = z.shape
    n_e, e_dim = embedding.shape
    assert c == e_dim
    hw = h * w
    n = b * hw

    # Free view of contiguous NCHW -> (B, C, H*W); no transpose round-trip needed.
    z3 = z.reshape(b, c, hw)

    zq3, idx4, sse4 = _vq_pallas(z3, embedding)

    # loss = mean((sg[z_q]-z)^2) + beta*mean((z_q-sg[z])^2) == (1+beta)*mean((z_q-z)^2)
    sse = jnp.sum(sse4)
    loss = (1.0 + beta) * sse / jnp.float32(n * e_dim)

    # Straight-through estimator: forward value is just z_q (already NCHW layout).
    # TODO(synk): stop_gradient / custom_vjp semantics only matter for backward.
    z_q = zq3.reshape(b, c, h, w)

    # Index order b-major then h*W+w == flattened NHWC order of the reference module.
    min_idx = idx4.reshape(n, 1)

    # The module also returns the full (N, n_e) one-hot; build it here as glue and
    # reuse it for the usage stats (the kernel writes no (N, n_e)-sized output and
    # no per-tile histograms).
    min_encodings = jax.nn.one_hot(min_idx[:, 0], n_e, dtype=jnp.float32)
    e_mean = jnp.mean(min_encodings, axis=0)
    perplexity = jnp.exp(-jnp.sum(e_mean * jnp.log(e_mean + 1e-10)))

    return loss, z_q, perplexity, min_encodings, min_idx


if __name__ == "__main__":
    # Module hyper-parameters.
    n_e = 16       # number of embeddings
    e_dim = 4      # embedding dimension (== channels)
    beta = 0.25
    mean, std = 0.0, 1.0

    # Deterministic parameter init (embedding.weight ~ N(mean, std)).
    key = jax.random.PRNGKey(0)
    k_emb, k_z = jax.random.split(key)
    embedding = mean + std * jax.random.normal(k_emb, (n_e, e_dim), dtype=jnp.float32)

    # Example encoder output z: (B, C, H, W) = (2, 4, 16, 16)  -> N = 512 rows.
    z = jax.random.normal(k_z, (2, e_dim, 16, 16), dtype=jnp.float32)

    loss, z_q, perplexity, min_encodings, min_idx = vector_quantizer_forward(
        z, embedding, beta)
    jax.block_until_ready((loss, z_q, perplexity, min_encodings, min_idx))

    # Sanity checks against a pure-JAX reference (same math as the PyTorch module).
    z_flat = jnp.transpose(z, (0, 2, 3, 1)).reshape(-1, e_dim)
    d_ref = (jnp.sum(z_flat**2, axis=1, keepdims=True)
             + jnp.sum(embedding**2, axis=1)
             - 2.0 * z_flat @ embedding.T)
    idx_ref = jnp.argmin(d_ref, axis=1).astype(jnp.int32)
    assert jnp.all(min_idx[:, 0] == idx_ref)

    zq_ref = embedding[idx_ref].reshape(2, 16, 16, e_dim).transpose(0, 3, 1, 2)
    assert jnp.allclose(z_q, zq_ref, atol=1e-5)

    loss_ref = (1.0 + beta) * jnp.mean((zq_ref - z) ** 2)
    assert jnp.allclose(loss, loss_ref, rtol=1e-5, atol=1e-6)

    enc_ref = jax.nn.one_hot(idx_ref, n_e, dtype=jnp.float32)
    assert jnp.all(min_encodings == enc_ref)
    e_mean_ref = jnp.mean(enc_ref, axis=0)
    perp_ref = jnp.exp(-jnp.sum(e_mean_ref * jnp.log(e_mean_ref + 1e-10)))
    assert jnp.allclose(perplexity, perp_ref, rtol=1e-5, atol=1e-6)

    print("KERNEL_OK")
</pallas_src>

<mosaic_0001>
module attributes {stable_mosaic.version = 11 : i64} {
  func.func @_vq_kernel(%arg0: i32, %arg1: i32, %arg2: memref<1x4x256xf32, #tpu.memory_space<vmem>>, %arg3: memref<16x4xf32, #tpu.memory_space<vmem>>, %arg4: memref<16x1xf32, #tpu.memory_space<vmem>>, %arg5: memref<1x4x256xf32, #tpu.memory_space<vmem>>, %arg6: memref<1x1x1x256xi32, #tpu.memory_space<vmem>>, %arg7: memref<1x1x1x1xf32, #tpu.memory_space<vmem>>) attributes {dimension_semantics = [#tpu.dimension_semantics<parallel>, #tpu.dimension_semantics<parallel>], iteration_bounds = array<i64: 2, 1>, scalar_prefetch = 0 : i64, scratch_operands = 0 : i64, tpu.core_type = #tpu.core_type<tc>, window_params = [{transform_indices = @transform_0, window_bounds = array<i64: 1, 4, 256>}, {pipeline_mode = #tpu.pipeline_mode<synchronous>, transform_indices = @transform_1, window_bounds = array<i64: 16, 4>}, {pipeline_mode = #tpu.pipeline_mode<synchronous>, transform_indices = @transform_2, window_bounds = array<i64: 16, 1>}, {transform_indices = @transform_3, window_bounds = array<i64: 1, 4, 256>}, {transform_indices = @transform_4, window_bounds = array<i64: 1, 1, 1, 256>}, {transform_indices = @transform_5, window_bounds = array<i64: 1, 1, 1, 1>}]} {
    %c0 = arith.constant 0 : index
    %c0_0 = arith.constant 0 : index
    %c0_1 = arith.constant 0 : index
    %0 = vector.load %arg2[%c0, %c0_0, %c0_1] : memref<1x4x256xf32, #tpu.memory_space<vmem>>, vector<1x4x256xf32>
    %1 = vector.shape_cast %0 : vector<1x4x256xf32> to vector<4x256xf32>
    %c0_2 = arith.constant 0 : index
    %c0_3 = arith.constant 0 : index
    %2 = vector.load %arg3[%c0_2, %c0_3] : memref<16x4xf32, #tpu.memory_space<vmem>>, vector<16x4xf32>
    %c0_4 = arith.constant 0 : index
    %c0_5 = arith.constant 0 : index
    %3 = vector.load %arg4[%c0_4, %c0_5] : memref<16x1xf32, #tpu.memory_space<vmem>>, vector<16x1xf32>
    %cst = arith.constant dense<0.000000e+00> : vector<16x256xf32>
    %4 = tpu.matmul %2, %1, %cst {dimension_numbers = #tpu.dot_dimension_numbers<[1], [0], [0], [1], [0, 0, 1, 1], [], []>} : vector<16x4xf32>, vector<4x256xf32>, vector<16x256xf32> -> vector<16x256xf32>
    %5 = vector.broadcast %3 : vector<16x1xf32> to vector<16x256xf32>
    %6 = arith.subf %5, %4 : vector<16x256xf32>
    %cst_6 = arith.constant dense<0x7F800000> : vector<256xf32>
    %7 = vector.multi_reduction <minimumf>, %6, %cst_6 [0] : vector<16x256xf32> to vector<256xf32>
    %8 = vector.shape_cast %7 : vector<256xf32> to vector<1x256xf32>
    %9 = tpu.iota {dimensions = array<i32: 0>} : vector<16x256xi32>
    %10 = vector.broadcast %8 : vector<1x256xf32> to vector<16x256xf32>
    %11 = arith.cmpf oeq, %6, %10 : vector<16x256xf32>
    %c16_i32 = arith.constant 16 : i32
    %12 = vector.broadcast %c16_i32 : i32 to vector<16x256xi32>
    %13 = arith.select %11, %9, %12 : vector<16x256xi1>, vector<16x256xi32>
    %cst_7 = arith.constant dense<2147483647> : vector<256xi32>
    %14 = vector.multi_reduction <minsi>, %13, %cst_7 [0] : vector<16x256xi32> to vector<256xi32>
    %15 = vector.shape_cast %14 : vector<256xi32> to vector<1x256xi32>
    %16 = vector.broadcast %15 : vector<1x256xi32> to vector<16x256xi32>
    %17 = arith.cmpi eq, %9, %16 : vector<16x256xi32>
    %18 = arith.extui %17 : vector<16x256xi1> to vector<16x256xi32>
    %19 = arith.sitofp %18 : vector<16x256xi32> to vector<16x256xf32>
    %cst_8 = arith.constant dense<0.000000e+00> : vector<4x256xf32>
    %20 = tpu.matmul %2, %19, %cst_8 {dimension_numbers = #tpu.dot_dimension_numbers<[0], [0], [1], [1], [0, 1, 1, 1], [], []>} : vector<16x4xf32>, vector<16x256xf32>, vector<4x256xf32> -> vector<4x256xf32>
    %c0_9 = arith.constant 0 : index
    %c0_10 = arith.constant 0 : index
    %c0_11 = arith.constant 0 : index
    %21 = vector.load %arg5[%c0_9, %c0_10, %c0_11] : memref<1x4x256xf32, #tpu.memory_space<vmem>>, vector<1x4x256xf32>
    %22 = vector.shape_cast %21 : vector<1x4x256xf32> to vector<4x256xf32>
    %23 = vector.shape_cast %20 : vector<4x256xf32> to vector<1x4x256xf32>
    tpu.vector_store %arg5[%c0_9, %c0_10, %c0_11], %23 {strides = array<i32>} : memref<1x4x256xf32, #tpu.memory_space<vmem>>, vector<1x4x256xf32>,
    %c0_12 = arith.constant 0 : index
    %c0_13 = arith.constant 0 : index
    %c0_14 = arith.constant 0 : index
    %c0_15 = arith.constant 0 : index
    %24 = vector.load %arg6[%c0_12, %c0_13, %c0_14, %c0_15] : memref<1x1x1x256xi32, #tpu.memory_space<vmem>>, vector<1x1x1x256xi32>
    %25 = vector.shape_cast %24 : vector<1x1x1x256xi32> to vector<1x256xi32>
    %26 = vector.shape_cast %15 : vector<1x256xi32> to vector<1x1x1x256xi32>
    tpu.vector_store %arg6[%c0_12, %c0_13, %c0_14, %c0_15], %26 {strides = array<i32>} : memref<1x1x1x256xi32, #tpu.memory_space<vmem>>, vector<1x1x1x256xi32>,
    %27 = arith.subf %20, %1 : vector<4x256xf32>
    %28 = arith.mulf %27, %27 : vector<4x256xf32>
    %cst_16 = arith.constant dense<0.000000e+00> : vector<4xf32>
    %29 = vector.multi_reduction <add>, %28, %cst_16 [1] : vector<4x256xf32> to vector<4xf32>
    %30 = vector.shape_cast %29 : vector<4xf32> to vector<4x1xf32>
    %cst_17 = arith.constant dense<0.000000e+00> : vector<1xf32>
    %31 = vector.multi_reduction <add>, %30, %cst_17 [0] : vector<4x1xf32> to vector<1xf32>
    %32 = vector.shape_cast %31 : vector<1xf32> to vector<1x1xf32>
    %c0_18 = arith.constant 0 : index
    %c0_19 = arith.constant 0 : index
    %c0_20 = arith.constant 0 : index
    %c0_21 = arith.constant 0 : index
    %33 = vector.load %arg7[%c0_18, %c0_19, %c0_20, %c0_21] : memref<1x1x1x1xf32, #tpu.memory_space<vmem>>, vector<1x1x1x1xf32>
    %34 = vector.shape_cast %33 : vector<1x1x1x1xf32> to vector<1x1xf32>
    %35 = vector.shape_cast %32 : vector<1x1xf32> to vector<1x1x1x1xf32>
    tpu.vector_store %arg7[%c0_18, %c0_19, %c0_20, %c0_21], %35 {strides = array<i32>} : memref<1x1x1x1xf32, #tpu.memory_space<vmem>>, vector<1x1x1x1xf32>,
    return
  }
  func.func @transform_0(%arg0: i32, %arg1: i32) -> (i32, i32, i32) {
    %c0_i32 = arith.constant 0 : i32
    %c0_i32_0 = arith.constant 0 : i32
    return %arg0, %c0_i32, %arg1 : i32, i32, i32
  }
  func.func @transform_1(%arg0: i32, %arg1: i32) -> (i32, i32) {
    %c0_i32 = arith.constant 0 : i32
    %c0_i32_0 = arith.constant 0 : i32
    %c0_i32_1 = arith.constant 0 : i32
    return %c0_i32, %c0_i32_0 : i32, i32
  }
  func.func @transform_2(%arg0: i32, %arg1: i32) -> (i32, i32) {
    %c0_i32 = arith.constant 0 : i32
    %c0_i32_0 = arith.constant 0 : i32
    %c0_i32_1 = arith.constant 0 : i32
    return %c0_i32, %c0_i32_0 : i32, i32
  }
  func.func @transform_3(%arg0: i32, %arg1: i32) -> (i32, i32, i32) {
    %c0_i32 = arith.constant 0 : i32
    %c0_i32_0 = arith.constant 0 : i32
    return %arg0, %c0_i32, %arg1 : i32, i32, i32
  }
  func.func @transform_4(%arg0: i32, %arg1: i32) -> (i32, i32, i32, i32) {
    %c0_i32 = arith.constant 0 : i32
    %c0_i32_0 = arith.constant 0 : i32
    %c0_i32_1 = arith.constant 0 : i32
    return %arg0, %arg1, %c0_i32, %c0_i32_0 : i32, i32, i32, i32
  }
  func.func @transform_5(%arg0: i32, %arg1: i32) -> (i32, i32, i32, i32) {
    %c0_i32 = arith.constant 0 : i32
    %c0_i32_0 = arith.constant 0 : i32
    %c0_i32_1 = arith.constant 0 : i32
    return %arg0, %arg1, %c0_i32, %c0_i32_0 : i32, i32, i32, i32
  }
}

</mosaic_0001>

<bundles_post_ra>
// kernel: vector_quantizer_forward.1
= control target key start
LH: loop header
LB: loop body
LE: loop exit
PB: predicated region body
PF: predicated region fallthrough
CT: control target
= control target key end

     0   :  { %s909_s18 = smov 0   ;;  %s911_s19 = smov 0   ;;  %s984_s0 = inlined_call_operand.vmem [shape: f32[2,4,256], index: 0, kind: input, shape index: {}]   ;;  %s985_s1 = inlined_call_operand.vmem [shape: f32[16,4], index: 1, kind: input, shape index: {}]   ;;  %s986_s2 = inlined_call_operand.vmem [shape: f32[16,1], index: 2, kind: input, shape index: {}]   ;;  %s987_s3 = inlined_call_operand.vmem [shape: f32[2,4,256], index: 3, kind: output, shape index: {0}]   ;;  %s988_s4 = inlined_call_operand.vmem [shape: s32[2,1,1,256], index: 4, kind: output, shape index: {1}]   ;;  %s989_s5 = inlined_call_operand.vmem [shape: f32[2,1,1,1], index: 5, kind: output, shape index: {2}]  }
   0x1   :  { %s913_s20 = smov 0  }
   0x2 LB: > { %s28_s21 = sadd.s32 1, %s869_s19  ;;  %p794_p0 = scmp.ge.s32.totalorder %s873_s20, 1  ;;  %s873_s20 = sphi %s913_s20, %s16_s20   ;;  %s869_s19 = sphi %s911_s19, %s991_s19   ;;  %s865_s18 = sphi %s909_s18, %s990_s18  }
   0x3   : > { %p30_p1 = scmp.ge.s32.totalorder %s28_s21, 2  ;;  %p217_p2 = scmp.lt.s32.totalorder %s873_s20, 3 }
   0x5   : > { %s993_s21 = smov (%p30_p1, %s28_s21), 0  ;;  %p218_p3 = pnand %p794_p0, %p217_p2 }
   0x6   : > { %p268_p4 = scmp.lt.s32.totalorder (!%p218_p3), %s865_s18, 1  ;;  %v302_v0 = vld [vmem:[%s985_s1] sm:$0xff] (!%p218_p3)  ;;  %v875_v1 = vmov (!%p218_p3), 0.0   ;;  %v876_v3 = vmov (!%p218_p3), 0   ;;  %v303_v4 = vld [vmem:[%s985_s1 + $0x8] sm:$0xff] (!%p218_p3)  ;;  %vm315_vm0 = vcmask (!%p218_p3), 1043456   ;;  %v425_v21 = vlaneseq (!%p218_p3) }
   0x7   : > { %221 = sbr.rel (%p218_p3) target bundleno = 653 (0x28d), region = 32  ;;  %384 = vmatprep.mubr.f32.mxu0 (!%p218_p3), %v875_v1  ;;  %v304_v2 = vld [vmem:[%s986_s2] sm:$0xff] (!%p218_p3)  ;;  %470 = vxpose.xlu1.b32.start [1/2] (short) (narrow) (!%p218_p3), %v302_v0, 8  ;;  %v305_v5 = vld [vmem:[%s986_s2 + $0x8] sm:$0xff] (!%p218_p3)  ;;  %vm308_vm1 = vcmask (!%p218_p3), 31744  }
   0x8   : > { %849 = vset.pattern.permute.xlu0 (!%p218_p3), %v876_v3  ;;  %570 = vmatprep.mubr.f32.mxu1 (!%p218_p3), %v875_v1  ;;  %v426_v26 = vshrl.u32 (!%p218_p3), %v425_v21, 7  ;;  %v877_v44 = vmov (!%p218_p3), 1966171168   ;;  %v878_v58 = vmov (!%p218_p3), 1.0|1.0  }
   0x9   : > { %399 = vperm.xlu0 (!%p218_p3), %849, %v304_v2   ;;  %v584_v45 = vunpack.c.l.s4 (!%p218_p3), %v877_v44 }
   0xa   : > { %v427_v31 = vadd.s32 (!%p218_p3), 8, %v426_v26 }
   0xb   : > { %471 = vxpose.xlu1.b32.end [2/2] (short) (narrow) (!%p218_p3), %v303_v4, 8  ;;  %v585_v50 = vunpack.c.0.s8 (!%p218_p3), %v584_v45 }
   0xd   : > { %404 = vperm.xlu0 (!%p218_p3), %849, %v305_v5   ;;  %v588_v55 = vsub.s32 (!%p218_p3), %v585_v50, %v426_v26 }
   0xe   : > { %s995_s18 = smov (!%p268_p4, %s865_s18), 1 }
   0xf   : > { %s815_s26 = sshll.u32 %s995_s18, 3  ;;  %s799_s9 = sshll.u32 %s995_s18, 1 }
  0x10   : > { %s275_s8 = scalar_lea.vmem %s984_s0, %s815_s26  ;;  %s294_s12 = scalar_lea.vmem %s988_s4, %s799_s9 }
  0x11   : > { %v947_v6 = vld [vmem:[%s275_s8] sm:$0xff]  ;;  %s285_s15 = scalar_lea.vmem %s987_s3, %s815_s26  ;;  %s300_s22 = scalar_lea.vmem %s989_s5, %s995_s18 }
  0x12   : > { %v951_v7 = vcombine.high %v947_v6, %v947_v6 }
  0x14   : > { %800 = vmatprep.subr.msk.mxu0 %vm315_vm0, %v951_v7 }
  0x15   : > { %801 = vmatpush1.msk.msra.mxu0 %vm315_vm0, %v947_v6 }
  0x16   : > { %802 = vmatmul.mubr.msk.f32.vlgmr.msra.gmra.mrb[0].mxu0 %vm308_vm1, %v302_v0 }
  0x17   : > { %390 = vmatprep.mubr.f32.mxu0 %v875_v1 }
  0x1a   : > { %803 = vmatmul.mubr.msk.f32.gmra.mrb[2].mxu0 %vm308_vm1, %v303_v4 }
  0x87   : > { %v486_v60 = vpop.trf.xlu1 }
  0x88   : > { %v400_v8 = vpop.permute.xlu0 %399 }
  0x8c   : > { %v405_v11 = vpop.permute.xlu0 %404 }
  0xe9   : > { %v386_v9 = vpop.f32.mrb[0].mxu0 }
  0xea   : > { %v388_v10 = vpop.f32.mrb[1].mxu0  ;;  %v407_v13 = vsub.f32 %v400_v8, %v386_v9 }
  0xeb   : > { %v408_v16 = vsub.f32 %v400_v8, %v388_v10 }
  0xed   : > { %v392_v12 = vpop.f32.mrb[2].mxu0 }
  0xee   : > { %v409_v14 = vsub.f32 %v405_v11, %v392_v12  ;;  %v394_v15 = vpop.f32.mrb[3].mxu0 }
  0xef   : > { %v410_v17 = vsub.f32 %v405_v11, %v394_v15 }
  0xf0   : > { %v411_v18 = vmin.f32 %v407_v13, %v409_v14 }
  0xf1   : > { %v418_v19 = vmin.f32 %v408_v16, %v410_v17 }
  0xf2   : > { %v412_v20 = vrot.slane %v411_v18, 4 }
  0xf3   : > { %v419_v22 = vrot.slane %v418_v19, 4 }
  0xf4   : > { %v413_v23 = vmin.f32 %v411_v18, %v412_v20 }
  0xf5   : > { %v420_v24 = vmin.f32 %v418_v19, %v419_v22 }
  0xf6   : > { %v414_v25 = vrot.slane %v413_v23, 2 }
  0xf7   : > { %v421_v27 = vrot.slane %v420_v24, 2 }
  0xf8   : > { %v415_v28 = vmin.f32 %v413_v23, %v414_v25 }
  0xf9   : > { %v422_v29 = vmin.f32 %v420_v24, %v421_v27 }
  0xfa   : > { %v416_v30 = vrot.slane %v415_v28, 1 }
  0xfb   : > { %v423_v32 = vrot.slane %v422_v29, 1 }
  0xfc   : > { %v417_v33 = vmin.f32 %v415_v28, %v416_v30 }
  0xfd   : > { %v424_v34 = vmin.f32 %v422_v29, %v423_v32 }
  0xfe   : > { %vm428_vm2 = vcmp.eq.f32.partialorder %v407_v13, %v417_v33  ;;  %vm430_vm3 = vcmp.eq.f32.partialorder %v409_v14, %v417_v33 }
  0xff   : > { %v432_v35 = vsel %vm428_vm2, %v426_v26, 16  ;;  %v434_v36 = vsel %vm430_vm3, %v427_v31, 16  ;;  %vm429_vm4 = vcmp.eq.f32.partialorder %v408_v16, %v424_v34  ;;  %vm431_vm5 = vcmp.eq.f32.partialorder %v410_v17, %v424_v34 }
 0x100   : > { %vm436_vm6 = vcmp.lt.s32.totalorder %v432_v35, %v434_v36  ;;  %v433_v37 = vsel %vm429_vm4, %v426_v26, 16  ;;  %v435_v38 = vsel %vm431_vm5, %v427_v31, 16  ;;  %vm599_vm5 = vcmp.lt.s32.totalorder %v425_v21, 256 }
 0x101   : > { %v437_v39 = vsel %vm436_vm6, %v432_v35, %v434_v36  ;;  %vm447_vm7 = vcmp.lt.s32.totalorder %v433_v37, %v435_v38  ;;  %vm502_vm6 = vcmask 130048  }
 0x102   : > { %v438_v40 = vrot.slane %v437_v39, 4  ;;  %v448_v41 = vsel %vm447_vm7, %v433_v37, %v435_v38  ;;  %vm619_vm7 = vcmask 0  }
 0x103   : > { %v449_v42 = vrot.slane %v448_v41, 4 }
 0x104   : > { %vm439_vm8 = vcmp.lt.s32.totalorder %v437_v39, %v438_v40 }
 0x105   : > { %v440_v43 = vsel %vm439_vm8, %v437_v39, %v438_v40  ;;  %vm450_vm9 = vcmp.lt.s32.totalorder %v448_v41, %v449_v42 }
 0x106   : > { %v441_v46 = vrot.slane %v440_v43, 2  ;;  %v451_v47 = vsel %vm450_vm9, %v448_v41, %v449_v42 }
 0x107   : > { %v452_v48 = vrot.slane %v451_v47, 2 }
 0x108   : > { %vm442_vm10 = vcmp.lt.s32.totalorder %v440_v43, %v441_v46 }
 0x109   : > { %vm453_vm11 = vcmp.lt.s32.totalorder %v451_v47, %v452_v48  ;;  %v443_v49 = vsel %vm442_vm10, %v440_v43, %v441_v46 }
 0x10a   : > { %v454_v51 = vsel %vm453_vm11, %v451_v47, %v452_v48  ;;  %v444_v52 = vrot.slane %v443_v49, 1 }
 0x10b   : > { %v455_v53 = vrot.slane %v454_v51, 1 }
 0x10c   : > { %vm445_vm12 = vcmp.lt.s32.totalorder %v443_v49, %v444_v52 }
 0x10d   : > { %vm456_vm13 = vcmp.lt.s32.totalorder %v454_v51, %v455_v53  ;;  %v446_v54 = vsel %vm445_vm12, %v443_v49, %v444_v52 }
 0x10e   : > { %v457_v56 = vsel %vm456_vm13, %v454_v51, %v455_v53  ;;  %vm458_vm14 = vcmp.eq.s32.totalorder %v426_v26, %v446_v54  ;;  %vm460_vm15 = vcmp.eq.s32.totalorder %v427_v31, %v446_v54 }
 0x10f   : > { %vm459_vm1 = vcmp.eq.s32.totalorder %v426_v26, %v457_v56  ;;  %vm461_vm2 = vcmp.eq.s32.totalorder %v427_v31, %v457_v56  ;;  %v582_v57 = vcombine.low %v446_v54, %v457_v56  ;;  %vm819_vm4 = vmpackc.low %vm460_vm15, %vm458_vm14 }
 0x110   : > { %vm817_vm3 = vmpackc.low %vm461_vm2, %vm459_vm1 }
 0x111   : > { %818 = vmatprep.subr.msk.bf16.mxu1 %vm817_vm3, %v878_v58  ;;  %v589_v59 = vrot.slane %v582_v57, %v588_v55 }
 0x112   : > { %820 = vmatpush1.bf16.msk.msra.mxu1 %vm819_vm4, %v878_v58 }
 0x113   : > { %v596_v61 = vrot.slane %v589_v59, %v588_v55 }
 0x115   : > { %601 = vst.msk [vmem:[%s294_s12] sm:$0x3] %vm599_vm5, %v596_v61  ;;  %812 = vmatmul.mubr.msk.f32.vlgmr.msra.gmra.mrb[0].mxu1 %vm502_vm6, %v486_v60 }
 0x1e8   : > { %v572_v62 = vpop.f32.mrb[0].mxu1 }
 0x1e9   : > { %v603_v63 = vsub.f32 %v572_v62, %v947_v6  ;;  %v574_v0 = vpop.f32.mrb[1].mxu1 }
 0x1ea   : > { %v579_v1 = vcombine.low %v572_v62, %v574_v0  ;;  %v604_v2 = vsub.f32 %v574_v0, %v951_v7 }
 0x1eb   : > { %v605_v3 = vmul.f32 %v603_v63, %v603_v63 }
 0x1ec   : > { %581 = vst [vmem:[%s285_s15] sm:$0xff] %v579_v1  ;;  %v606_v4 = vmul.f32 %v604_v2, %v604_v2 }
 0x1ed   : > { %v607_v5 = vsel %vm315_vm0, %v605_v3, 0.0 }
 0x1ee   : > { %v608_v8 = vsel %vm315_vm0, %v606_v4, 0.0 }
 0x1ef   : > { %v609_v9 = vadd.f32 %v608_v8, %v607_v5 }
 0x1f1   : > { %610 = vadd.xlane.f32.xlu0 %v609_v9 }
 0x27e   : > { %v611_v6 = vpop.xlane.xlu0 %610 }
 0x27f   : > { %v612_v10 = vsel %vm315_vm0, %v611_v6, 0.0 }
 0x280   : > { %v613_v11 = vrot.slane %v612_v10, 4 }
 0x282   : > { %v614_v12 = vadd.f32 %v613_v11, %v612_v10 }
 0x284   : > { %v615_v13 = vrot.slane %v614_v12, 2 }
 0x286   : > { %v616_v14 = vadd.f32 %v615_v13, %v614_v12 }
 0x288   : > { %v617_v15 = vrot.slane %v616_v14, 1 }
 0x28a   : > { %v618_v7 = vadd.f32 %v617_v15, %v616_v14 }
 0x28c   : > { %620 = vst.msk [vmem:[%s300_s22] sm:$0x1] %vm619_vm7, %v618_v7 }
 0x28d PF: > { %s16_s20 = sadd.s32 1, %s873_s20   ;;  %s990_s18 = smov %s869_s19 }
 0x28e   : > { %p13_p5 = scmp.ge.s32.totalorder %s16_s20, 4   ;;  %s991_s19 = smov %s993_s21 }
 0x290   :  { %15 = sbr.rel (!%p13_p5) target bundleno = 2 (0x2), region = 86 }

</bundles_post_ra>
